<compile_context>
chip_gen: v6e
topology: v6e:2x2x1
jax: 0.10.0
libtpu: 0.0.40
codegen_flags: <defaults>
</compile_context>

<pallas_src>
import functools
import math

import jax
import jax.numpy as jnp
from jax import lax
from jax.experimental import pallas as pl
from jax.experimental.pallas import tpu as pltpu

LANE = 128


# ----------------------------------------------------------------------------
# Buffer setup (equivalent of PositionalEncoding.__init__)
# ----------------------------------------------------------------------------
def make_pe_table(max_len: int, d_model: int) -> jnp.ndarray:
    """Sinusoidal positional-encoding table, shape (max_len, d_model), float32."""
    position = jnp.arange(max_len, dtype=jnp.float32)[:, None]               # (L, 1)
    div_term = jnp.exp(
        jnp.arange(0, d_model, 2, dtype=jnp.float32) * (-math.log(10000.0) / d_model)
    )                                                                         # (D/2,)
    pe = jnp.zeros((max_len, d_model), dtype=jnp.float32)
    pe = pe.at[:, 0::2].set(jnp.sin(position * div_term))
    pe = pe.at[:, 1::2].set(jnp.cos(position * div_term))
    return pe


# ----------------------------------------------------------------------------
# Pallas kernel: y = dropout(x + pe[:S]) on a (row_tile, B*D) slab
# ----------------------------------------------------------------------------
def _pe_add_dropout_kernel(seed_ref, x_ref, pe_ref, o_ref, *,
                           p, apply_dropout, batch, row_tile, use_hw_prng):
    x = x_ref[...]                                        # (tS, B*Dp), x dtype
    pe = pe_ref[...].astype(x.dtype)                      # (tS, Dp)
    if batch > 1:
        # Lane-axis replication [pe | pe | ... | pe] matches the (S, B*Dp) view
        # of x (row-major (S, B, Dp)).  Dp % 128 == 0 -> pure vreg placement.
        pe = jnp.tile(pe, (1, batch))                     # (tS, B*Dp)
    y = x + pe

    if apply_dropout:
        scale = jnp.asarray(1.0 / (1.0 - p), dtype=y.dtype)
        # Drop with probability p: raw uint32 bits below threshold are dropped.
        threshold = jnp.uint32(min(int(round(p * 4294967296.0)), 4294967295))
        if use_hw_prng:
            # Hardware PRNG; per-grid-step distinct stream.
            pltpu.prng_seed(seed_ref[0] + pl.program_id(0))
            bits = pltpu.bitcast(pltpu.prng_random_bits(y.shape), jnp.uint32)
        else:
            # Non-TPU / interpret fallback: counter-based hash with the row and
            # column terms hoisted, so only the finalizer runs per element.
            rows = (lax.broadcasted_iota(jnp.uint32, (y.shape[0], 1), 0)
                    + (pl.program_id(0) * row_tile).astype(jnp.uint32))
            cols = lax.broadcasted_iota(jnp.uint32, (1, y.shape[1]), 1)
            row_term = rows * jnp.uint32(0x9E3779B1) + seed_ref[0].astype(jnp.uint32)
            col_term = cols * jnp.uint32(0x7FEB352D)
            h = row_term + col_term                       # broadcast to y.shape
            h = h ^ (h >> 16)
            h = h * jnp.uint32(0x85EBCA6B)
            h = h ^ (h >> 13)
            h = h * jnp.uint32(0xC2B2AE35)
            h = h ^ (h >> 16)
            bits = h
        keep = bits >= threshold
        y = jnp.where(keep, y * scale, jnp.zeros((), dtype=y.dtype))

    o_ref[...] = y.astype(o_ref.dtype)


# ----------------------------------------------------------------------------
# Tile policy: big streaming blocks, but never a degenerate single-step grid
# ----------------------------------------------------------------------------
def _choose_row_tile(S, row_bytes, *, target_bytes=4 << 20, min_steps=8):
    """Row tile (multiple of 8) targeting ~4 MiB blocks AND >= ~min_steps grid steps."""
    if S <= 8:
        return S
    # Cap from the block-size target (streaming kernels hit ~85% HBM roofline
    # at multi-MiB tiles; each grid step costs ~0.35 us fixed overhead).
    t_bytes = max(8, (target_bytes // max(row_bytes, 1)) // 8 * 8)
    # Cap so the grid keeps enough steps for pipelining + dual-TC sharding.
    steps = min(min_steps, max(2, S // 8))
    per_step = -(-S // steps)                      # ceil
    t_steps = max(8, ((per_step + 7) // 8) * 8)    # round up to multiple of 8
    t = min(t_bytes, t_steps)
    return S if t >= S else t


# ----------------------------------------------------------------------------
# Wrapper (equivalent of PositionalEncoding.forward)
# ----------------------------------------------------------------------------
def positional_encoding_forward(x, pe_table, *, seed=0, p=0.1, train=True,
                                row_tile=None, use_hw_prng=None,
                                donate_x=False, x_buffer_count=None):
    """x: (S, B, D); pe_table: (max_len, D) float32. Returns dropout(x + pe[:S])."""
    S, B, D = x.shape
    if train and p >= 1.0:          # torch.nn.Dropout(p=1.0): everything dropped
        return jnp.zeros_like(x)
    apply_dropout = bool(train) and p > 0.0
    if use_hw_prng is None:
        use_hw_prng = (jax.default_backend() == "tpu")

    # Math stays in x's dtype (bf16-native VPU on v6e/v7x, no-op for f32).
    # TODO(synk): on v5e with bf16 inputs, cast pe/x to f32 here (no bf16 VALU).
    pe = pe_table[:S].astype(x.dtype)              # (S, D)   == pe[:x.size(0)]

    # Pad d_model so D (and hence B*D) is a multiple of 128 lanes: keeps the pe
    # lane-replication a pure vreg placement and all stores unmasked vst.
    Dp = D if D % LANE == 0 else ((D + LANE - 1) // LANE) * LANE
    if Dp != D:
        x = jnp.pad(x, ((0, 0), (0, 0), (0, Dp - D)))
        pe = jnp.pad(pe, ((0, 0), (0, Dp - D)))
    BDp = B * Dp
    x2d = x.reshape(S, BDp)                        # contiguous -> free, lane-dense view

    if row_tile is None:
        row_tile = _choose_row_tile(S, BDp * x.dtype.itemsize)
    row_tile = min(int(row_tile), S)
    grid = (pl.cdiv(S, row_tile),)

    # VMEM budget: double-buffered (x_in + out) + pe, clamped to v7x's 64 MiB/TC.
    block_bytes = row_tile * BDp * x.dtype.itemsize
    pe_bytes = row_tile * Dp * pe.dtype.itemsize
    vmem_limit = int(min(64 << 20,
                         max(32 << 20, 2 * (2 * block_bytes + pe_bytes) + (2 << 20))))

    kernel = functools.partial(_pe_add_dropout_kernel, p=float(p),
                               apply_dropout=apply_dropout, batch=B,
                               row_tile=row_tile, use_hw_prng=use_hw_prng)
    seed_arr = jnp.asarray([seed], dtype=jnp.int32)

    if x_buffer_count is not None:
        # v7x-only knob: deeper buffering if compute per tile ~ DMA time.
        x_spec = pl.BlockSpec((row_tile, BDp), lambda i: (i, 0),
                              pipeline_mode=pl.Buffered(int(x_buffer_count)))
    else:
        x_spec = pl.BlockSpec((row_tile, BDp), lambda i: (i, 0))

    # Alias x2d -> output when the caller donates x (saves an HBM allocation).
    aliases = {1: 0} if (donate_x and Dp == D) else {}

    out2d = pl.pallas_call(
        kernel,
        out_shape=jax.ShapeDtypeStruct((S, BDp), x.dtype),
        grid=grid,
        in_specs=[
            pl.BlockSpec(memory_space=pltpu.MemorySpace.SMEM),      # seed scalar
            x_spec,                                                  # x row tile
            pl.BlockSpec((row_tile, Dp), lambda i: (i, 0)),          # pe row tile
        ],
        out_specs=pl.BlockSpec((row_tile, BDp), lambda i: (i, 0)),
        compiler_params=pltpu.CompilerParams(
            dimension_semantics=("parallel",),      # shard grid across TCs on v7x
            vmem_limit_bytes=vmem_limit,
        ),
        input_output_aliases=aliases,
    )(seed_arr, x2d, pe)

    out = out2d.reshape(S, B, Dp)
    if Dp != D:
        out = out[:, :, :D]
    return out


# ----------------------------------------------------------------------------
# Demo / self-test
# ----------------------------------------------------------------------------
if __name__ == "__main__":
    key = jax.random.PRNGKey(0)
    S, B, D = 256, 2, 128            # (seq_len, batch, d_model); D % 128 == 0
    MAX_LEN = 4096                   # module default is 100000; smaller table keeps demo light
    P_DROP = 0.1

    x = jax.random.normal(key, (S, B, D), dtype=jnp.float32)
    pe_table = make_pe_table(MAX_LEN, D)
    ref = x + pe_table[:S][:, None, :]

    # Eval mode (dropout = identity): exact positional-add semantics.
    y_eval = positional_encoding_forward(x, pe_table, p=P_DROP, train=False)
    jax.block_until_ready(y_eval)
    assert y_eval.shape == (S, B, D)
    assert jnp.allclose(y_eval, ref, atol=1e-6), "positional-add mismatch"

    # Train mode (dropout active); auto tile policy gives a multi-step grid
    # (row_tile=32 -> 8 steps), exercising the pipeline and per-step PRNG seeding.
    y_train = positional_encoding_forward(x, pe_table, seed=123, p=P_DROP, train=True)
    jax.block_until_ready(y_train)
    assert y_train.shape == (S, B, D)

    scale = 1.0 / (1.0 - P_DROP)
    scaled = ref * scale
    is_scaled = jnp.abs(y_train - scaled) < 1e-4     # kept: scaled positional value
    is_zero = jnp.abs(y_train) < 1e-6                # dropped: exactly zero
    # Every element is either dropped (0) or the scaled positional-encoded value.
    assert bool(jnp.all(is_scaled | is_zero)), "dropout value mismatch"
    drop_frac = float(jnp.mean((is_zero & ~is_scaled).astype(jnp.float32)))
    assert 0.02 < drop_frac < 0.25, f"dropout fraction {drop_frac} far from p={P_DROP}"

    print("KERNEL_OK")
</pallas_src>

<mosaic_0001>
module attributes {stable_mosaic.version = 11 : i64} {
  func.func @_pe_add_dropout_kernel(%arg0: i32, %arg1: memref<1xi32, #tpu.memory_space<smem>>, %arg2: memref<32x256xf32, #tpu.memory_space<vmem>>, %arg3: memref<32x128xf32, #tpu.memory_space<vmem>>, %arg4: memref<32x256xf32, #tpu.memory_space<vmem>>) attributes {dimension_semantics = [#tpu.dimension_semantics<parallel>], iteration_bounds = array<i64: 8>, scalar_prefetch = 0 : i64, scratch_operands = 0 : i64, tpu.core_type = #tpu.core_type<tc>, window_params = [{transform_indices = @transform_0, window_bounds = array<i64: 1>}, {transform_indices = @transform_1, window_bounds = array<i64: 32, 256>}, {transform_indices = @transform_2, window_bounds = array<i64: 32, 128>}, {transform_indices = @transform_3, window_bounds = array<i64: 32, 256>}]} {
    %c0 = arith.constant 0 : index
    %c0_0 = arith.constant 0 : index
    %0 = vector.load %arg2[%c0, %c0_0] : memref<32x256xf32, #tpu.memory_space<vmem>>, vector<32x256xf32>
    %c0_1 = arith.constant 0 : index
    %c0_2 = arith.constant 0 : index
    %1 = vector.load %arg3[%c0_1, %c0_2] : memref<32x128xf32, #tpu.memory_space<vmem>>, vector<32x128xf32>
    %2 = tpu.concatenate %1, %1 in 1 : vector<32x128xf32>, vector<32x128xf32> -> vector<32x256xf32>
    %3 = arith.addf %0, %2 : vector<32x256xf32>
    %c0_3 = arith.constant 0 : index
    %c0_4 = arith.constant 0 : index
    %4 = vector.load %arg4[%c0_3, %c0_4] : memref<32x256xf32, #tpu.memory_space<vmem>>, vector<32x256xf32>
    tpu.vector_store %arg4[%c0_3, %c0_4], %3 {strides = array<i32>} : memref<32x256xf32, #tpu.memory_space<vmem>>, vector<32x256xf32>,
    return
  }
  func.func @transform_0(%arg0: i32) -> i32 {
    %c0_i32 = arith.constant 0 : i32
    %c0_i32_0 = arith.constant 0 : i32
    return %c0_i32 : i32
  }
  func.func @transform_1(%arg0: i32) -> (i32, i32) {
    %c0_i32 = arith.constant 0 : i32
    %c0_i32_0 = arith.constant 0 : i32
    return %arg0, %c0_i32 : i32, i32
  }
  func.func @transform_2(%arg0: i32) -> (i32, i32) {
    %c0_i32 = arith.constant 0 : i32
    %c0_i32_0 = arith.constant 0 : i32
    return %arg0, %c0_i32 : i32, i32
  }
  func.func @transform_3(%arg0: i32) -> (i32, i32) {
    %c0_i32 = arith.constant 0 : i32
    %c0_i32_0 = arith.constant 0 : i32
    return %arg0, %c0_i32 : i32, i32
  }
}

</mosaic_0001>

<bundles_post_ra>
// kernel: tpu_custom_call.1
= control target key start
LH: loop header
LB: loop body
LE: loop exit
PB: predicated region body
PF: predicated region fallthrough
CT: control target
= control target key end

     0   :  { %9 = vsyncpa [#allocation4], 0  ;;  %s827_s0 = inlined_call_operand.<no memory space> [shape: s32[1], index: 0, kind: input, shape index: {}]   ;;  %s828_s1 = inlined_call_operand.hbm [shape: f32[256,256], index: 1, kind: input, shape index: {}]   ;;  %s829_s2 = inlined_call_operand.hbm [shape: f32[256,128], index: 2, kind: input, shape index: {}]   ;;  %s830_s3 = inlined_call_operand.hbm [shape: f32[256,256], index: 3, kind: output, shape index: {}]  }
   0x1   :  { %11 = vsyncpa [#allocation4 + $0x1], 0 }
   0x2   :  { %12 = vsyncpa [#allocation7], 0 }
   0x3   :  { %14 = vsyncpa [#allocation7 + $0x1], 0 }
   0x4   :  { %15 = vsyncpa [#allocation5], 0 }
   0x5   :  { %17 = vsyncpa [#allocation5 + $0x1], 0  ;;  %s610_s12 = smov 0   ;;  %s612_s13 = smov 0  }
   0x6   :  { %s614_s0 = smov 0   ;;  %s616_s14 = smov 0  }
   0x7 LB: > { %s631_s15 = sadd.s32 4294967295, %s579_s14   ;;  %s373_s16 = sadd.s32 4294967294, %s579_s14   ;;  %s579_s14 = sphi %s616_s14, %s845_s14   ;;  %s575_s0 = sphi %s614_s0, %s844_s0   ;;  %s571_s13 = sphi %s612_s13, %s843_s13   ;;  %s567_s12 = sphi %s610_s12, %s842_s12  }
   0x8   : > { %s635_s17 = sadd.s32 1, %s579_s14   ;;  %s51_s18 = sadd.s32 1, %s575_s0 }
   0x9   : > { %s48_s19 = ssub.s32 %s579_s14, %s635_s17  ;;  %p58_p0 = scmp.ne.s32.totalorder %s575_s0, %s571_s13 }
   0xa   : > { %p49_p1 = scmp.eq.s32.totalorder %s48_s19, 0  ;;  %p59_p2 = scmp.eq.s32.totalorder %s579_s14, 0 }
   0xb   : > { %p64_p3 = scmp.ne.s32.totalorder %s571_s13, %s567_s12  ;;  %p65_p4 = scmp.eq.s32.totalorder %s631_s15, 0 }
   0xc   : > { %s647_s20 = scalar_select %p49_p1, %s575_s0, %s51_s18  }
   0xd   : > { %p649_p5 = por %p59_p2, %p58_p0  ;;  %p653_p6 = por %p65_p4, %p64_p3 }
   0xe   : > { %p114_p7 = scmp.eq.s32.totalorder %s631_s15, 7  ;;  %p120_p8 = scmp.eq.s32.totalorder %s373_s16, 7 }
   0xf   : > { %s834_s22 = scalar_select %p653_p6, 1, 0 }
  0x10   : > { %p415_p9 = scmp.lt.s32.totalorder %s579_s14, 8  ;;  %p659_p10 = por %p114_p7, %p58_p0 }
  0x11   : > { %p663_p11 = por %p120_p8, %p64_p3  ;;  %s668_s25 = sand.u32 1, %s575_s0  }
  0x12   : > { %s835_s23 = scalar_select %p659_p10, 1, 0 }
  0x13   : > { %s836_s24 = scalar_select %p663_p11, 1, 0 }
  0x14   : > { %s394_s26 = sshll.u32 %s579_s14, 10  ;;  %s376_s27 = sshll.u32 %s668_s25, 6 }
  0x15   : > { %s675_s30 = scalar_lea.hbm %s828_s1, %s394_s26  ;;  %s147_s4 = scalar_lea.vmem [#allocation3], %s376_s27 }
  0x16   : > { %s155_s5 = sshll.u32 %s147_s4, 4  ;;  %p679_p12 = pnand %p415_p9, %p649_p5  ;;  %s683_s5 = int_to_ptr.vmem [resolvable:$true] %s155_s5 }
  0x17   : > { %s144_s7 = scalar_lea.sflag [#allocation4], %s668_s25  ;;  %s455_s8 = scalar_lea.hbm %s675_s30, 1024 }
  0x18   : > { %p456_p13 = scmp.ne.s32.totalorder %s675_s30, %s455_s8  ;;  %p457_p0 = pneg %p679_p12 }
  0x19   : > { %s460_s11 = scalar_lea.hbm %s828_s1, 8192  ;;  %p461_p3 = scmp.lt.s32.totalorder %s675_s30, %s828_s1 }
  0x1a   : > { %p458_p1 = pnand %p457_p0, %p456_p13  ;;  %p462_p4 = scmp.lt.s32.totalorder %s460_s11, %s455_s8 }
  0x1c   : > { %p459_p2 = pneg %p458_p1  ;;  %p463_p5 = por %p462_p4, %p461_p3 }
  0x1e   : > { %p464_p7 = pnand %p463_p5, %p459_p2 }
  0x20   : > { %467 = shalt.err (!%p464_p7)
}
  0x21   : > { %s468_s19 = scalar_lea.vmem %s683_s5, 1024  ;;  %s581_s21 = smov [#allocation3]  }
  0x22   : > { %p469_p8 = scmp.ne.s32.totalorder %s683_s5, %s468_s19  ;;  %s473_s26 = sshll.u32 %s581_s21, 4  ;;  %s474_s26 = int_to_ptr.vmem [resolvable:$false] %s473_s26 }
  0x23   : > { %s475_s27 = scalar_lea.vmem %s474_s26, 2048  ;;  %p476_p1 = scmp.lt.s32.totalorder %s683_s5, %s474_s26 }
  0x24   : > { %p471_p9 = pnand %p469_p8, %p457_p0  ;;  %p477_p11 = scmp.lt.s32.totalorder %s475_s27, %s468_s19 }
  0x26   : > { %p472_p13 = pneg %p471_p9  ;;  %p478_p10 = por %p477_p11, %p476_p1 }
  0x28   : > { %p479_p3 = pnand %p478_p10, %p472_p13 }
  0x2a   : > { %482 = shalt.err (!%p479_p3)
}
  0x2b   : > { %s582_s28 = smov 256   ;;  %s583_s29 = smov 16  }
  0x2c   : > { %407 = dma.hbm_to_vmem [thread:$0]  (!%p679_p12), %s675_s30, 1024, %s683_s5, %s144_s7, %s582_s28, %s582_s28, %s583_s29  }
  0x2d   : > { %p383_p2 = scmp.ge.s32.totalorder %s579_s14, 1  ;;  %p184_p4 = scmp.lt.s32.totalorder %s579_s14, 9 }
  0x2e   : > { %s380_s4 = sshll.u32 %s668_s25, 5  ;;  %s395_s9 = sshll.u32 %s579_s14, 9 }
  0x2f   : > { %p715_p10 = pnand %p383_p2, %p184_p4  ;;  %s169_s10 = scalar_lea.vmem [#allocation6], %s380_s4 }
  0x30   : > { %s176_s11 = sshll.u32 %s169_s10, 4  ;;  %s723_s19 = scalar_lea.hbm %s829_s2, %s395_s9  ;;  %s725_s11 = int_to_ptr.vmem [resolvable:$true] %s176_s11 }
  0x31   : > { %s166_s30 = scalar_lea.sflag [#allocation7], %s668_s25  ;;  %s483_s5 = scalar_lea.hbm %s723_s19, 512 }
  0x32   : > { %p484_p11 = scmp.ne.s32.totalorder %s723_s19, %s483_s5  ;;  %s488_s26 = scalar_lea.hbm %s829_s2, 4096 }
  0x33   : > { %p489_p8 = scmp.lt.s32.totalorder %s723_s19, %s829_s2  ;;  %p490_p9 = scmp.lt.s32.totalorder %s488_s26, %s483_s5 }
  0x34   : > { %p486_p5 = pnand %p484_p11, %p457_p0 }
  0x35   : > { %p491_p13 = por %p490_p9, %p489_p8 }
  0x36   : > { %p487_p7 = pneg %p486_p5 }
  0x38   : > { %p492_p1 = pnand %p491_p13, %p487_p7 }
  0x3a   : > { %495 = shalt.err (!%p492_p1)
}
  0x3b   : > { %s496_s29 = scalar_lea.vmem %s725_s11, 512  ;;  %s584_s4 = smov [#allocation6]  }
  0x3c   : > { %p497_p3 = scmp.ne.s32.totalorder %s725_s11, %s496_s29  ;;  %s501_s9 = sshll.u32 %s584_s4, 4  ;;  %s502_s9 = int_to_ptr.vmem [resolvable:$false] %s501_s9 }
  0x3d   : > { %s503_s10 = scalar_lea.vmem %s502_s9, 1024  ;;  %p504_p11 = scmp.lt.s32.totalorder %s725_s11, %s502_s9 }
  0x3e   : > { %p499_p2 = pnand %p497_p3, %p457_p0  ;;  %p505_p5 = scmp.lt.s32.totalorder %s503_s10, %s496_s29 }
  0x40   : > { %p500_p4 = pneg %p499_p2  ;;  %p506_p6 = por %p505_p5, %p504_p11 }
  0x42   : > { %p507_p8 = pnand %p506_p6, %p500_p4 }
  0x44   : > { %510 = shalt.err (!%p507_p8)
}
  0x45   : > { %s585_s16 = smov 128   ;;  %s586_s18 = smov 8  }
  0x46   : > { %410 = dma.hbm_to_vmem [thread:$0]  (!%p679_p12), %s723_s19, 512, %s725_s11, %s166_s30, %s585_s16, %s585_s16, %s586_s18  }
  0x47   : > { %188 = sbr.rel (%p715_p10) target bundleno = 106 (0x6a), region = 32  ;;  %s755_s5 = sand.u32 (!%p715_p10), 1, %s571_s13  }
  0x48   : > { %s384_s7 = sshll.u32 (!%p715_p10), %s755_s5, 6  ;;  %s191_s21 = scalar_lea.sflag (!%p715_p10), [#allocation4], %s755_s5 }
  0x49   : > { %s759_s26 = scalar_lea.vmem (!%p715_p10), [#allocation3], %s384_s7  ;;  %p839_p6 = scmp.ne.s32.totalorder (!%p715_p10), %s834_s22, 0 }
  0x4c   : > { %554 = dma.done.wait (%p839_p6), %s191_s21, 1024  }
  0x4d   : > { %556 = vsyncadd (%p839_p6), %s191_s21, 4294966272  ;;  %s385_s25 = sshll.u32 %s755_s5, 5  ;;  %s200_s6 = scalar_lea.sflag [#allocation7], %s755_s5 }
  0x4e   : > { %s203_s8 = scalar_lea.vmem [#allocation6], %s385_s25 }
  0x4f   : > { %558 = dma.done.wait (%p839_p6), %s200_s6, 512  }
  0x50   : > { %560 = vsyncadd (%p839_p6), %s200_s6, 4294966784  ;;  %v234_v0 = vld [vmem:[%s759_s26] sm:$0xff]  ;;  %s230_s11 = scalar_lea.vmem [#allocation8], %s384_s7  ;;  %v235_v2 = vld [vmem:[%s759_s26 + $0x8] sm:$0xff]  ;;  %s397_s30 = sshll.u32 %s631_s15, 10 }
  0x51   : > { %v242_v1 = vld [vmem:[%s203_s8] sm:$0xff]  ;;  %s277_s19 = sshll.u32 %s230_s11, 4  ;;  %v236_v5 = vld [vmem:[%s759_s26 + $0x10] sm:$0xff]  ;;  %v243_v6 = vld [vmem:[%s203_s8 + $0x8] sm:$0xff]  ;;  %s785_s27 = scalar_lea.hbm %s830_s3, %s397_s30  ;;  %s778_s19 = int_to_ptr.vmem [resolvable:$true] %s277_s19 }
  0x52   : > { %v246_v3 = vadd.f32 %v242_v1, %v234_v0  ;;  %v247_v4 = vadd.f32 %v242_v1, %v235_v2  ;;  %v237_v7 = vld [vmem:[%s759_s26 + $0x18] sm:$0xff]  ;;  %v248_v8 = vadd.f32 %v243_v6, %v236_v5  ;;  %v238_v10 = vld [vmem:[%s759_s26 + $0x20] sm:$0xff]  ;;  %v244_v11 = vld [vmem:[%s203_s8 + $0x10] sm:$0xff]  ;;  %s263_s28 = scalar_lea.sflag [#allocation5], %s755_s5  ;;  %s511_s29 = scalar_lea.vmem %s778_s19, 1024 }
  0x53   : > { %v249_v9 = vadd.f32 %v243_v6, %v237_v7  ;;  %v239_v12 = vld [vmem:[%s759_s26 + $0x28] sm:$0xff]  ;;  %v250_v13 = vadd.f32 %v244_v11, %v238_v10  ;;  %v240_v15 = vld [vmem:[%s759_s26 + $0x30] sm:$0xff]  ;;  %v245_v16 = vld [vmem:[%s203_s8 + $0x18] sm:$0xff]  ;;  %p512_p12 = scmp.ne.s32.totalorder %s778_s19, %s511_s29  ;;  %p840_p0 = scmp.ne.s32.totalorder %s835_s23, 0 }
  0x54   : > { %254 = vst [vmem:[%s230_s11] sm:$0xff] %v246_v3  ;;  %255 = vst [vmem:[%s230_s11 + $0x8] sm:$0xff] %v247_v4  ;;  %v251_v14 = vadd.f32 %v244_v11, %v239_v12  ;;  %v241_v17 = vld [vmem:[%s759_s26 + $0x38] sm:$0xff]  ;;  %v252_v18 = vadd.f32 %v245_v16, %v240_v15  ;;  %s587_s4 = smov [#allocation8]  }
  0x55   : > { %256 = vst [vmem:[%s230_s11 + $0x10] sm:$0xff] %v248_v8  ;;  %257 = vst [vmem:[%s230_s11 + $0x18] sm:$0xff] %v249_v9  ;;  %v253_v19 = vadd.f32 %v245_v16, %v241_v17  ;;  %p513_p10 = pnand %p512_p12, %p840_p0  ;;  %s515_s9 = sshll.u32 %s587_s4, 4  ;;  %s516_s9 = int_to_ptr.vmem [resolvable:$false] %s515_s9 }
  0x56   : > { %258 = vst [vmem:[%s230_s11 + $0x20] sm:$0xff] %v250_v13  ;;  %259 = vst [vmem:[%s230_s11 + $0x28] sm:$0xff] %v251_v14  ;;  %s517_s10 = scalar_lea.vmem %s516_s9, 2048  ;;  %p518_p9 = scmp.lt.s32.totalorder %s778_s19, %s516_s9 }
  0x57   : > { %260 = vst [vmem:[%s230_s11 + $0x30] sm:$0xff] %v252_v18  ;;  %261 = vst [vmem:[%s230_s11 + $0x38] sm:$0xff] %v253_v19  ;;  %p514_p7 = pneg %p513_p10  ;;  %p519_p13 = scmp.lt.s32.totalorder %s517_s10, %s511_s29 }
  0x59   : > { %p520_p1 = por %p519_p13, %p518_p9 }
  0x5b   : > { %p521_p3 = pnand %p520_p1, %p514_p7 }
  0x5d   : > { %524 = shalt.err (!%p521_p3)
}
  0x5e   : > { %s525_s16 = scalar_lea.hbm %s785_s27, 1024  ;;  %s529_s21 = scalar_lea.hbm %s830_s3, 8192 }
  0x5f   : > { %p526_p2 = scmp.ne.s32.totalorder %s785_s27, %s525_s16  ;;  %p530_p5 = scmp.lt.s32.totalorder %s785_s27, %s830_s3 }
  0x60   : > { %p531_p8 = scmp.lt.s32.totalorder %s529_s21, %s525_s16 }
  0x61   : > { %p527_p4 = pnand %p526_p2, %p840_p0 }
  0x62   : > { %p532_p6 = por %p531_p8, %p530_p5 }
  0x63   : > { %p528_p11 = pneg %p527_p4 }
  0x65   : > { %p533_p12 = pnand %p532_p6, %p528_p11 }
  0x67   : > { %536 = shalt.err (!%p533_p12)
}
  0x68   : > { %s588_s6 = smov 256   ;;  %s589_s8 = smov 16  }
  0x69   : > { %402 = dma.vmem_to_hbm [thread:$0]  (%p840_p0), %s778_s19, 1024, %s785_s27, %s263_s28, %s588_s6, %s588_s6, %s589_s8  }
  0x6a PF: > { %p416_p10 = scmp.ge.s32.totalorder %s579_s14, 2  ;;  %s292_s11 = sand.u32 1, %s567_s12  }
  0x6b   : > { %p841_p7 = scmp.ne.s32.totalorder %s836_s24, 0  ;;  %s293_s30 = scalar_lea.sflag [#allocation5], %s292_s11 }
  0x6d   : > { %p412_p9 = pnand %p416_p10, %p841_p7 }
  0x6f   : > { %p413_p13 = pneg %p412_p9 }
  0x71   : > { %562 = dma.done.wait (%p413_p13), %s293_s30, 1024  }
  0x72   : > { %564 = vsyncadd (%p413_p13), %s293_s30, 4294966272  ;;  %p20_p1 = scmp.ge.s32.totalorder %s635_s17, 10   ;;  %s842_s12 = smov %s571_s13 }
  0x73   : > { %s843_s13 = smov %s575_s0  ;;  %s844_s0 = smov %s647_s20 }
  0x74   : > { %s845_s14 = smov %s635_s17  ;;  %22 = sbr.rel (!%p20_p1) target bundleno = 7 (0x7), region = 90 }
  0x79   :  { %298 = vsyncpa [#allocation4], 1 }
  0x7a   :  { %300 = vsyncpa [#allocation4 + $0x1], 1 }
  0x7b   :  { %301 = vsyncpa [#allocation7], 1 }
  0x7c   :  { %303 = vsyncpa [#allocation7 + $0x1], 1 }
  0x7d   :  { %304 = vsyncpa [#allocation5], 1 }
  0x7e   :  { %306 = vsyncpa [#allocation5 + $0x1], 1 }

</bundles_post_ra>
